<compile_context>
chip_gen: v6e
topology: v6e:2x2x1
jax: 0.10.0
libtpu: 0.0.40
codegen_flags: <defaults>
</compile_context>

<pallas_src>
import numpy as np
import jax
import jax.numpy as jnp
from jax import lax
from jax.experimental import pallas as pl
from jax.experimental.pallas import tpu as pltpu

# ----------------------------- config ---------------------------------------
B = 2          # batch
N = 8          # tokens (sequence length)
D = 32         # embedding dim
H = 4          # num heads
DH = D // H    # dim per head
MLP = 4 * D    # hidden dim of FFN (mlp_ratio=4)
EPS = 1e-5     # nn.LayerNorm default eps
BN = B * N     # flattened tokens
HBN = H * BN   # lane-stacked score columns (head-major, token-minor)
NEG = -1e30    # additive cross-batch mask value
SCALE = float(DH) ** -0.5
_INV_SQRT2 = float(1.0 / np.sqrt(2.0))

# ---- compile-time constants (numpy -> device once; no iota work in-kernel) ----
# mask_v[c, d] = 1 iff score column c (head c // BN) matches feature column d (head d // DH)
_MASK_V_NP = (np.arange(HBN)[:, None] // BN == np.arange(D)[None, :] // DH).astype(np.float32)
# batch_bias[r, c] = 0 if query row r and key column c come from the same batch, else -1e30
_BATCH_BIAS_NP = np.where(
    (np.arange(BN)[:, None] // N) == ((np.arange(HBN)[None, :] % BN) // N),
    0.0, NEG).astype(np.float32)
MASK_V = jnp.asarray(_MASK_V_NP)          # (HBN, D)
BATCH_BIAS = jnp.asarray(_BATCH_BIAS_NP)  # (BN, HBN)

# packed small-vector operand: one 128-lane row per vector
# row 0: g1 | 1: b1 | 2: bqkv (96) | 3: bo | 4: g2 | 5: b2 | 6: bf1 (128) | 7: bf2
VEC_W = 128


# ----------------------------- kernel helpers --------------------------------
def _layernorm(x, gamma, beta):
    mu = jnp.mean(x, axis=-1, keepdims=True)
    var = jnp.mean((x - mu) ** 2, axis=-1, keepdims=True)
    return (x - mu) * lax.rsqrt(var + EPS) * gamma + beta


def _gelu_exact(x):
    # matches torch.nn.GELU() (erf-based, non-approximate)
    return 0.5 * x * (1.0 + lax.erf(x * _INV_SQRT2))


# ----------------------------- kernel ---------------------------------------
def vit_block_kernel(x_ref, wqkv_ref, wo_ref, wf1_ref, wf2_ref, vec_ref,
                     mask_v_ref, bias_ref, o_ref):
    x = x_ref[...]                                   # (BN, D)

    # packed per-row vectors: every slice starts at lane 0 -> free views
    g1 = vec_ref[0:1, 0:D]
    b1 = vec_ref[1:2, 0:D]
    bqkv = vec_ref[2:3, 0:3 * D]
    bo = vec_ref[3:4, 0:D]
    g2 = vec_ref[4:5, 0:D]
    b2 = vec_ref[5:6, 0:D]
    bf1 = vec_ref[6:7, 0:MLP]
    bf2 = vec_ref[7:8, 0:D]

    # ---- attention branch: PreNorm(LayerNorm) -> MHSA (all batches fused) ----
    # TODO(synk): at real ViT sizes cast matmul operands to bf16 (keep f32
    # accumulate); kept f32 here to stay within 1e-5 of the torch f32 reference.
    xn = _layernorm(x, g1, b1)
    qkv = jnp.dot(xn, wqkv_ref[...],
                  preferred_element_type=jnp.float32) + bqkv      # (BN, 3D)
    q = qkv[:, 0:D]
    k = qkv[:, D:2 * D]
    v = qkv[:, 2 * D:3 * D]

    mask_v = mask_v_ref[...]                         # (HBN, D) 0/1 head indicator
    bias = bias_ref[...]                             # (BN, HBN) additive batch mask

    # head-block-diagonal K/V replicas: row h*BN + r holds head-h slice of token r
    k_rep = jnp.concatenate([k] * H, axis=0) * mask_v             # (HBN, D)
    v_rep = jnp.concatenate([v] * H, axis=0) * mask_v             # (HBN, D)

    # all B*H heads' (N,N) score blocks lane-stacked: single NT matmul
    s = lax.dot_general(q, k_rep, (((1,), (1,)), ((), ())),
                        preferred_element_type=jnp.float32) * SCALE + bias  # (BN, HBN)
    # TODO(synk): global row max across heads (algebraically exact); switch to a
    # per-head max if heads' logit scales can diverge wildly at production scale.
    s = s - jnp.max(s, axis=-1, keepdims=True)
    p = jnp.exp(s)                                   # cross-batch cols exp to exactly 0

    # fused PV + per-head-denominator matmul: one (BN, 2D) result
    pvd = jnp.concatenate([v_rep, mask_v], axis=1)                # (HBN, 2D)
    pv = jnp.dot(p, pvd, preferred_element_type=jnp.float32)      # (BN, 2D)
    att = pv[:, 0:D] / pv[:, D:2 * D]                # exact divide (no approx recip)

    att = jnp.dot(att, wo_ref[...],
                  preferred_element_type=jnp.float32) + bo
    x1 = x + att                                     # residual 1

    # ---- FFN branch: PreNorm(LayerNorm) -> Linear -> GELU -> Linear ----
    xn2 = _layernorm(x1, g2, b2)
    hidden = jnp.dot(xn2, wf1_ref[...],
                     preferred_element_type=jnp.float32) + bf1    # (BN, 4D)
    hidden = _gelu_exact(hidden)
    ffn = jnp.dot(hidden, wf2_ref[...],
                  preferred_element_type=jnp.float32) + bf2       # (BN, D)

    # masked vst (last dim 32 < 128) is accepted: output is only 2 KB, a
    # relayout to a lane-dense shape would cost more than the masked store.
    o_ref[...] = x1 + ffn                            # residual 2


# ----------------------------- wrapper ---------------------------------------
def _pad_lanes(v, width=VEC_W):
    return jnp.pad(v, ((0, 0), (0, width - v.shape[1])))


@jax.jit
def vit_block(x, params):
    (g1, b1, wqkv, bqkv, wo, bo, g2, b2, wf1, bf1, wf2, bf2) = params
    # one (8, 128) packed operand; every vector starts at a lane-tile boundary
    vec = jnp.concatenate(
        [_pad_lanes(t) for t in (g1, b1, bqkv, bo, g2, b2, bf1, bf2)], axis=0)
    assert vec.shape == (8, VEC_W)
    xf = x.reshape(BN, D)                            # row-major flatten; free in wrapper
    vmem = pltpu.MemorySpace.VMEM
    out = pl.pallas_call(
        vit_block_kernel,
        out_shape=jax.ShapeDtypeStruct((BN, D), jnp.float32),
        in_specs=[pl.BlockSpec(memory_space=vmem)] * 8,
        out_specs=pl.BlockSpec(memory_space=vmem),
        # No grid: whole problem is VMEM-resident; per-step grid overhead
        # (~0.35 us) would exceed the entire compute at this shape.
        # TODO(synk): at production ViT sizes add a parallel token-tile grid
        # axis (dimension_semantics=("parallel",)) for v7x's 2nd TensorCore,
        # K-tile wqkv/wf1/wf2 with pltpu.CompilerParams(vmem_limit_bytes=...)
        # for v7x's 64 MiB VMEM, and cross-call prefetch next layer's weights.
    )(xf, wqkv, wo, wf1, wf2, vec, MASK_V, BATCH_BIAS)
    return out.reshape(B, N, D)


# ----------------------------- reference (plain JAX) --------------------------
def vit_block_ref(x, params):
    (g1, b1, wqkv, bqkv, wo, bo, g2, b2, wf1, bf1, wf2, bf2) = params

    def ln(v, g, be):
        mu = jnp.mean(v, axis=-1, keepdims=True)
        var = jnp.mean((v - mu) ** 2, axis=-1, keepdims=True)
        return (v - mu) / jnp.sqrt(var + EPS) * g + be

    xn = ln(x, g1, b1)
    qkv = xn @ wqkv + bqkv
    q, k, v = jnp.split(qkv, 3, axis=-1)
    q = q.reshape(B, N, H, DH).transpose(0, 2, 1, 3)
    k = k.reshape(B, N, H, DH).transpose(0, 2, 1, 3)
    v = v.reshape(B, N, H, DH).transpose(0, 2, 1, 3)
    s = jnp.einsum("bhqd,bhkd->bhqk", q, k) * (DH ** -0.5)
    p = jax.nn.softmax(s, axis=-1)
    att = jnp.einsum("bhqk,bhkd->bhqd", p, v).transpose(0, 2, 1, 3).reshape(B, N, D)
    att = att @ wo + bo
    x1 = x + att
    xn2 = ln(x1, g2, b2)
    hid = jax.nn.gelu(xn2 @ wf1 + bf1, approximate=False)
    return x1 + (hid @ wf2 + bf2)


# ----------------------------- main -------------------------------------------
if __name__ == "__main__":
    key = jax.random.PRNGKey(0)
    keys = jax.random.split(key, 8)

    x = jax.random.normal(keys[0], (B, N, D), dtype=jnp.float32)

    # deterministic synthetic parameters (LayerNorm: gamma=1, beta=0)
    g1 = jnp.ones((1, D), jnp.float32)
    b1 = jnp.zeros((1, D), jnp.float32)
    g2 = jnp.ones((1, D), jnp.float32)
    b2 = jnp.zeros((1, D), jnp.float32)
    wqkv = 0.05 * jax.random.normal(keys[1], (D, 3 * D), jnp.float32)
    bqkv = jnp.zeros((1, 3 * D), jnp.float32)
    wo = 0.05 * jax.random.normal(keys[2], (D, D), jnp.float32)
    bo = 0.01 * jax.random.normal(keys[3], (1, D), jnp.float32)
    wf1 = 0.05 * jax.random.normal(keys[4], (D, MLP), jnp.float32)
    bf1 = 0.01 * jax.random.normal(keys[5], (1, MLP), jnp.float32)
    wf2 = 0.05 * jax.random.normal(keys[6], (MLP, D), jnp.float32)
    bf2 = 0.01 * jax.random.normal(keys[7], (1, D), jnp.float32)

    params = (g1, b1, wqkv, bqkv, wo, bo, g2, b2, wf1, bf1, wf2, bf2)

    out = jax.block_until_ready(vit_block(x, params))
    ref = jax.block_until_ready(vit_block_ref(x, params))

    # Exact softmax divide restored -> tight tolerance restored.
    np.testing.assert_allclose(np.asarray(out), np.asarray(ref), rtol=1e-5, atol=1e-5)
    print("KERNEL_OK")
</pallas_src>

<mosaic_0001>
module attributes {stable_mosaic.version = 11 : i64} {
  func.func @vit_block_kernel(%arg0: memref<16x32xf32, #tpu.memory_space<vmem>>, %arg1: memref<32x96xf32, #tpu.memory_space<vmem>>, %arg2: memref<32x32xf32, #tpu.memory_space<vmem>>, %arg3: memref<32x128xf32, #tpu.memory_space<vmem>>, %arg4: memref<128x32xf32, #tpu.memory_space<vmem>>, %arg5: memref<8x128xf32, #tpu.memory_space<vmem>>, %arg6: memref<64x32xf32, #tpu.memory_space<vmem>>, %arg7: memref<16x64xf32, #tpu.memory_space<vmem>>, %arg8: memref<16x32xf32, #tpu.memory_space<vmem>>) attributes {dimension_semantics = [], scalar_prefetch = 0 : i64, scratch_operands = 0 : i64, tpu.core_type = #tpu.core_type<tc>} {
    %c0 = arith.constant 0 : index
    %c0_0 = arith.constant 0 : index
    %0 = vector.load %arg0[%c0, %c0_0] : memref<16x32xf32, #tpu.memory_space<vmem>>, vector<16x32xf32>
    %c0_1 = arith.constant 0 : index
    %c0_2 = arith.constant 0 : index
    %1 = vector.load %arg5[%c0_1, %c0_2] : memref<8x128xf32, #tpu.memory_space<vmem>>, vector<1x32xf32>
    %c1 = arith.constant 1 : index
    %c0_3 = arith.constant 0 : index
    %2 = vector.load %arg5[%c1, %c0_3] : memref<8x128xf32, #tpu.memory_space<vmem>>, vector<1x32xf32>
    %c2 = arith.constant 2 : index
    %c0_4 = arith.constant 0 : index
    %3 = vector.load %arg5[%c2, %c0_4] : memref<8x128xf32, #tpu.memory_space<vmem>>, vector<1x96xf32>
    %c3 = arith.constant 3 : index
    %c0_5 = arith.constant 0 : index
    %4 = vector.load %arg5[%c3, %c0_5] : memref<8x128xf32, #tpu.memory_space<vmem>>, vector<1x32xf32>
    %c4 = arith.constant 4 : index
    %c0_6 = arith.constant 0 : index
    %5 = vector.load %arg5[%c4, %c0_6] : memref<8x128xf32, #tpu.memory_space<vmem>>, vector<1x32xf32>
    %c5 = arith.constant 5 : index
    %c0_7 = arith.constant 0 : index
    %6 = vector.load %arg5[%c5, %c0_7] : memref<8x128xf32, #tpu.memory_space<vmem>>, vector<1x32xf32>
    %c6 = arith.constant 6 : index
    %c0_8 = arith.constant 0 : index
    %7 = vector.load %arg5[%c6, %c0_8] : memref<8x128xf32, #tpu.memory_space<vmem>>, vector<1x128xf32>
    %c7 = arith.constant 7 : index
    %c0_9 = arith.constant 0 : index
    %8 = vector.load %arg5[%c7, %c0_9] : memref<8x128xf32, #tpu.memory_space<vmem>>, vector<1x32xf32>
    %cst = arith.constant dense<0.000000e+00> : vector<16xf32>
    %9 = vector.multi_reduction <add>, %0, %cst [1] : vector<16x32xf32> to vector<16xf32>
    %10 = vector.shape_cast %9 : vector<16xf32> to vector<16x1xf32>
    %cst_10 = arith.constant 3.200000e+01 : f32
    %11 = vector.broadcast %cst_10 : f32 to vector<16x1xf32>
    %12 = arith.divf %10, %11 : vector<16x1xf32>
    %13 = vector.broadcast %12 : vector<16x1xf32> to vector<16x32xf32>
    %14 = arith.subf %0, %13 : vector<16x32xf32>
    %15 = arith.mulf %14, %14 : vector<16x32xf32>
    %cst_11 = arith.constant dense<0.000000e+00> : vector<16xf32>
    %16 = vector.multi_reduction <add>, %15, %cst_11 [1] : vector<16x32xf32> to vector<16xf32>
    %17 = vector.shape_cast %16 : vector<16xf32> to vector<16x1xf32>
    %cst_12 = arith.constant 3.200000e+01 : f32
    %18 = vector.broadcast %cst_12 : f32 to vector<16x1xf32>
    %19 = arith.divf %17, %18 : vector<16x1xf32>
    %20 = vector.broadcast %12 : vector<16x1xf32> to vector<16x32xf32>
    %21 = arith.subf %0, %20 : vector<16x32xf32>
    %cst_13 = arith.constant 9.99999974E-6 : f32
    %22 = vector.broadcast %cst_13 : f32 to vector<16x1xf32>
    %23 = arith.addf %19, %22 : vector<16x1xf32>
    %24 = math.rsqrt %23 : vector<16x1xf32>
    %25 = vector.broadcast %24 : vector<16x1xf32> to vector<16x32xf32>
    %26 = arith.mulf %21, %25 : vector<16x32xf32>
    %27 = vector.broadcast %1 : vector<1x32xf32> to vector<16x32xf32>
    %28 = arith.mulf %26, %27 : vector<16x32xf32>
    %29 = vector.broadcast %2 : vector<1x32xf32> to vector<16x32xf32>
    %30 = arith.addf %28, %29 : vector<16x32xf32>
    %c0_14 = arith.constant 0 : index
    %c0_15 = arith.constant 0 : index
    %31 = vector.load %arg1[%c0_14, %c0_15] : memref<32x96xf32, #tpu.memory_space<vmem>>, vector<32x96xf32>
    %cst_16 = arith.constant dense<0.000000e+00> : vector<16x96xf32>
    %32 = tpu.matmul %30, %31, %cst_16 {dimension_numbers = #tpu.dot_dimension_numbers<[1], [0], [0], [1], [0, 0, 1, 1], [], []>} : vector<16x32xf32>, vector<32x96xf32>, vector<16x96xf32> -> vector<16x96xf32>
    %33 = vector.broadcast %3 : vector<1x96xf32> to vector<16x96xf32>
    %34 = arith.addf %32, %33 : vector<16x96xf32>
    %35 = vector.extract_strided_slice %34 {offsets = [0, 0], sizes = [16, 32], strides = [1, 1]} : vector<16x96xf32> to vector<16x32xf32>
    %36 = vector.extract_strided_slice %34 {offsets = [0, 32], sizes = [16, 32], strides = [1, 1]} : vector<16x96xf32> to vector<16x32xf32>
    %37 = vector.extract_strided_slice %34 {offsets = [0, 64], sizes = [16, 32], strides = [1, 1]} : vector<16x96xf32> to vector<16x32xf32>
    %c0_17 = arith.constant 0 : index
    %c0_18 = arith.constant 0 : index
    %38 = vector.load %arg6[%c0_17, %c0_18] : memref<64x32xf32, #tpu.memory_space<vmem>>, vector<64x32xf32>
    %c0_19 = arith.constant 0 : index
    %c0_20 = arith.constant 0 : index
    %39 = vector.load %arg7[%c0_19, %c0_20] : memref<16x64xf32, #tpu.memory_space<vmem>>, vector<16x64xf32>
    %40 = tpu.concatenate %36, %36, %36, %36 in 0 : vector<16x32xf32>, vector<16x32xf32>, vector<16x32xf32>, vector<16x32xf32> -> vector<64x32xf32>
    %41 = arith.mulf %40, %38 : vector<64x32xf32>
    %42 = tpu.concatenate %37, %37, %37, %37 in 0 : vector<16x32xf32>, vector<16x32xf32>, vector<16x32xf32>, vector<16x32xf32> -> vector<64x32xf32>
    %43 = arith.mulf %42, %38 : vector<64x32xf32>
    %cst_21 = arith.constant dense<0.000000e+00> : vector<16x64xf32>
    %44 = tpu.matmul %35, %41, %cst_21 {dimension_numbers = #tpu.dot_dimension_numbers<[1], [1], [0], [0], [0, 0, 1, 0], [], []>} : vector<16x32xf32>, vector<64x32xf32>, vector<16x64xf32> -> vector<16x64xf32>
    %cst_22 = arith.constant 0.353553385 : f32
    %45 = vector.broadcast %cst_22 : f32 to vector<16x64xf32>
    %46 = arith.mulf %44, %45 : vector<16x64xf32>
    %47 = arith.addf %46, %39 : vector<16x64xf32>
    %cst_23 = arith.constant dense<0xFF800000> : vector<16xf32>
    %48 = vector.multi_reduction <maximumf>, %47, %cst_23 [1] : vector<16x64xf32> to vector<16xf32>
    %49 = vector.shape_cast %48 : vector<16xf32> to vector<16x1xf32>
    %50 = vector.broadcast %49 : vector<16x1xf32> to vector<16x64xf32>
    %51 = arith.subf %47, %50 : vector<16x64xf32>
    %52 = math.exp %51 : vector<16x64xf32>
    %53 = tpu.concatenate %43, %38 in 1 : vector<64x32xf32>, vector<64x32xf32> -> vector<64x64xf32>
    %cst_24 = arith.constant dense<0.000000e+00> : vector<16x64xf32>
    %54 = tpu.matmul %52, %53, %cst_24 {dimension_numbers = #tpu.dot_dimension_numbers<[1], [0], [0], [1], [0, 0, 1, 1], [], []>} : vector<16x64xf32>, vector<64x64xf32>, vector<16x64xf32> -> vector<16x64xf32>
    %55 = vector.extract_strided_slice %54 {offsets = [0, 0], sizes = [16, 32], strides = [1, 1]} : vector<16x64xf32> to vector<16x32xf32>
    %56 = vector.extract_strided_slice %54 {offsets = [0, 32], sizes = [16, 32], strides = [1, 1]} : vector<16x64xf32> to vector<16x32xf32>
    %57 = arith.divf %55, %56 : vector<16x32xf32>
    %c0_25 = arith.constant 0 : index
    %c0_26 = arith.constant 0 : index
    %58 = vector.load %arg2[%c0_25, %c0_26] : memref<32x32xf32, #tpu.memory_space<vmem>>, vector<32x32xf32>
    %cst_27 = arith.constant dense<0.000000e+00> : vector<16x32xf32>
    %59 = tpu.matmul %57, %58, %cst_27 {dimension_numbers = #tpu.dot_dimension_numbers<[1], [0], [0], [1], [0, 0, 1, 1], [], []>} : vector<16x32xf32>, vector<32x32xf32>, vector<16x32xf32> -> vector<16x32xf32>
    %60 = vector.broadcast %4 : vector<1x32xf32> to vector<16x32xf32>
    %61 = arith.addf %59, %60 : vector<16x32xf32>
    %62 = arith.addf %0, %61 : vector<16x32xf32>
    %cst_28 = arith.constant dense<0.000000e+00> : vector<16xf32>
    %63 = vector.multi_reduction <add>, %62, %cst_28 [1] : vector<16x32xf32> to vector<16xf32>
    %64 = vector.shape_cast %63 : vector<16xf32> to vector<16x1xf32>
    %cst_29 = arith.constant 3.200000e+01 : f32
    %65 = vector.broadcast %cst_29 : f32 to vector<16x1xf32>
    %66 = arith.divf %64, %65 : vector<16x1xf32>
    %67 = vector.broadcast %66 : vector<16x1xf32> to vector<16x32xf32>
    %68 = arith.subf %62, %67 : vector<16x32xf32>
    %69 = arith.mulf %68, %68 : vector<16x32xf32>
    %cst_30 = arith.constant dense<0.000000e+00> : vector<16xf32>
    %70 = vector.multi_reduction <add>, %69, %cst_30 [1] : vector<16x32xf32> to vector<16xf32>
    %71 = vector.shape_cast %70 : vector<16xf32> to vector<16x1xf32>
    %cst_31 = arith.constant 3.200000e+01 : f32
    %72 = vector.broadcast %cst_31 : f32 to vector<16x1xf32>
    %73 = arith.divf %71, %72 : vector<16x1xf32>
    %74 = vector.broadcast %66 : vector<16x1xf32> to vector<16x32xf32>
    %75 = arith.subf %62, %74 : vector<16x32xf32>
    %cst_32 = arith.constant 9.99999974E-6 : f32
    %76 = vector.broadcast %cst_32 : f32 to vector<16x1xf32>
    %77 = arith.addf %73, %76 : vector<16x1xf32>
    %78 = math.rsqrt %77 : vector<16x1xf32>
    %79 = vector.broadcast %78 : vector<16x1xf32> to vector<16x32xf32>
    %80 = arith.mulf %75, %79 : vector<16x32xf32>
    %81 = vector.broadcast %5 : vector<1x32xf32> to vector<16x32xf32>
    %82 = arith.mulf %80, %81 : vector<16x32xf32>
    %83 = vector.broadcast %6 : vector<1x32xf32> to vector<16x32xf32>
    %84 = arith.addf %82, %83 : vector<16x32xf32>
    %c0_33 = arith.constant 0 : index
    %c0_34 = arith.constant 0 : index
    %85 = vector.load %arg3[%c0_33, %c0_34] : memref<32x128xf32, #tpu.memory_space<vmem>>, vector<32x128xf32>
    %cst_35 = arith.constant dense<0.000000e+00> : vector<16x128xf32>
    %86 = tpu.matmul %84, %85, %cst_35 {dimension_numbers = #tpu.dot_dimension_numbers<[1], [0], [0], [1], [0, 0, 1, 1], [], []>} : vector<16x32xf32>, vector<32x128xf32>, vector<16x128xf32> -> vector<16x128xf32>
    %87 = vector.broadcast %7 : vector<1x128xf32> to vector<16x128xf32>
    %88 = arith.addf %86, %87 : vector<16x128xf32>
    %cst_36 = arith.constant 5.000000e-01 : f32
    %89 = vector.broadcast %cst_36 : f32 to vector<16x128xf32>
    %90 = arith.mulf %89, %88 : vector<16x128xf32>
    %cst_37 = arith.constant 0.707106769 : f32
    %91 = vector.broadcast %cst_37 : f32 to vector<16x128xf32>
    %92 = arith.mulf %88, %91 : vector<16x128xf32>
    %93 = math.erf %92 : vector<16x128xf32>
    %cst_38 = arith.constant 1.000000e+00 : f32
    %94 = vector.broadcast %cst_38 : f32 to vector<16x128xf32>
    %95 = arith.addf %94, %93 : vector<16x128xf32>
    %96 = arith.mulf %90, %95 : vector<16x128xf32>
    %c0_39 = arith.constant 0 : index
    %c0_40 = arith.constant 0 : index
    %97 = vector.load %arg4[%c0_39, %c0_40] : memref<128x32xf32, #tpu.memory_space<vmem>>, vector<128x32xf32>
    %cst_41 = arith.constant dense<0.000000e+00> : vector<16x32xf32>
    %98 = tpu.matmul %96, %97, %cst_41 {dimension_numbers = #tpu.dot_dimension_numbers<[1], [0], [0], [1], [0, 0, 1, 1], [], []>} : vector<16x128xf32>, vector<128x32xf32>, vector<16x32xf32> -> vector<16x32xf32>
    %99 = vector.broadcast %8 : vector<1x32xf32> to vector<16x32xf32>
    %100 = arith.addf %98, %99 : vector<16x32xf32>
    %101 = arith.addf %62, %100 : vector<16x32xf32>
    %c0_42 = arith.constant 0 : index
    %c0_43 = arith.constant 0 : index
    %102 = vector.load %arg8[%c0_42, %c0_43] : memref<16x32xf32, #tpu.memory_space<vmem>>, vector<16x32xf32>
    tpu.vector_store %arg8[%c0_42, %c0_43], %101 {strides = array<i32>} : memref<16x32xf32, #tpu.memory_space<vmem>>, vector<16x32xf32>,
    return
  }
}

</mosaic_0001>

<bundles_post_ra>
// kernel: vit_block.1
= control target key start
LH: loop header
LB: loop body
LE: loop exit
PB: predicated region body
PF: predicated region fallthrough
CT: control target
= control target key end

     0   :  { %13 = vsyncpa [#allocation3], 0  ;;  %s1507_s0 = inlined_call_operand.vmem [shape: f32[16,32], index: 0, kind: input, shape index: {}]   ;;  %s1508_s1 = inlined_call_operand.vmem [shape: f32[32,96], index: 1, kind: input, shape index: {}]   ;;  %s1509_s2 = inlined_call_operand.vmem [shape: f32[32,32], index: 2, kind: input, shape index: {}]   ;;  %s1510_s3 = inlined_call_operand.vmem [shape: f32[32,128], index: 3, kind: input, shape index: {}]   ;;  %s1511_s4 = inlined_call_operand.vmem [shape: f32[128,32], index: 4, kind: input, shape index: {}]   ;;  %s1512_s5 = inlined_call_operand.vmem [shape: f32[8,128], index: 5, kind: input, shape index: {}]   ;;  %s1513_s6 = inlined_call_operand.vmem [shape: f32[64,32], index: 6, kind: input, shape index: {}]   ;;  %s1514_s7 = inlined_call_operand.hbm [shape: f32[16,64], index: 7, kind: input, shape index: {}]   ;;  %s1515_s8 = inlined_call_operand.hbm [shape: f32[16,32], index: 8, kind: output, shape index: {}]  }
   0x1   :  { %14 = vsyncpa [#allocation4], 0  ;;  %s1139_s27 = smov [#allocation2]  }
   0x2   :  { %s34_s28 = sshll.u32 %s1139_s27, 4  ;;  %s35_s28 = int_to_ptr.vmem [resolvable:$true] %s34_s28 }
   0x3   :  { %s1103_s29 = scalar_lea.vmem %s35_s28, 256  ;;  %p1108_p1 = scmp.lt.s32.totalorder %s35_s28, %s35_s28 }
   0x4   :  { %p1104_p0 = scmp.ne.s32.totalorder %s35_s28, %s1103_s29  ;;  %p1109_p2 = scmp.lt.s32.totalorder %s1103_s29, %s1103_s29 }
   0x6   :  { %p1110_p3 = por %p1109_p2, %p1108_p1 }
   0x8   :  { %p1111_p4 = pnand %p1110_p3, %p1104_p0 }
   0xa   :  { %1114 = shalt.err (!%p1111_p4)
}
   0xb   :  { %s1140_s30 = smov 128   ;;  %s1141_s9 = smov 8  }
   0xc   :  { %40 = dma.hbm_to_vmem [thread:$0]  %s1514_s7, 256, %s35_s28, [#allocation3], %s1140_s30, %s1140_s30, %s1141_s9  }
   0xd   :  { %1135 = dma.done.wait [#allocation3], 256  }
   0xe   :  { %1136 = vsyncadd [#allocation3], 4294967040  ;;  %vm54_vm0 = vcmask 261120   ;;  %v1200_v0 = vld [vmem:[%s1507_s0] sm:$0xff]  ;;  %v1205_v1 = vld [vmem:[%s1507_s0 + $0x8] sm:$0xff]  ;;  %s1142_s26 = smov 32  }
   0xf   :  { %v55_v2 = vsel %vm54_vm0, %v1200_v0, 0.0  ;;  %v58_v3 = vsel %vm54_vm0, %v1205_v1, 0.0  ;;  %v97_v14 = vld [vmem:[%s1508_s1 + $0x18] sm:$0xff]  ;;  %v96_v15 = vld [vmem:[%s1508_s1 + $0x10] sm:$0xff]  ;;  %v95_v16 = vld [vmem:[%s1508_s1 + $0x8] sm:$0xff]  ;;  %s1143_s21 = smov 96  }
  0x10   :  { %56 = vadd.xlane.f32.xlu0 %v55_v2  ;;  %962 = vmatprep.subr.mxu0 %v97_v14  ;;  %v94_v17 = vld [vmem:[%s1508_s1] sm:$0xff]  ;;  %v1230_v18 = vld [vmem:[%s1513_s6 + $0x30] sm:$0xff]  ;;  %v1235_v19 = vld [vmem:[%s1513_s6 + $0x38] sm:$0xff]  ;;  %s1144_s22 = smov 64   ;;  %vm390_vm1 = vcmask 523264   ;;  %s1145_s28 = smov [#allocation5]  }
  0x11   :  { %963 = vmatpush3.msra.mxu0 %v97_v14  ;;  %v1242_v20 = vld [vmem:[%s1513_s6 + $0x28] sm:$0xff]  ;;  %v1247_v21 = vld [vmem:[%s1513_s6 + $0x18] sm:$0xff]  ;;  %v187_v22 = vld [vmem:[%s1513_s6 + $0x20] sm:$0xff]  ;;  %s868_s1 = sshll.u32 %s1145_s28, 4  ;;  %s869_s1 = int_to_ptr.vmem [resolvable:$true] %s868_s1 }
  0x12   :  { %964 = vmatprep.subr.mxu0 %v96_v15  ;;  %v1257_v23 = vld [vmem:[%s1513_s6 + $0x8] sm:$0xff]  ;;  %v185_v24 = vld [vmem:[%s1513_s6 + $0x10] sm:$0xff]  ;;  %v183_v25 = vld [vmem:[%s1513_s6] sm:$0xff]  ;;  %s1115_s29 = scalar_lea.vmem %s869_s1, 256  ;;  %p1120_p6 = scmp.lt.s32.totalorder %s869_s1, %s869_s1 }
  0x13   :  { %965 = vmatpush3.msra.mxu0 %v96_v15  ;;  %v880_v33 = vld [vmem:[%s1512_s5] ss:$0 sm:$0xff]  ;;  %v881_v35 = vld [vmem:[%s1512_s5 + $0x1] ss:$0 sm:$0xff]  ;;  %v882_v44 = vld [vmem:[%s1512_s5 + $0x2] ss:$0 sm:$0xff]  ;;  %p1116_p5 = scmp.ne.s32.totalorder %s869_s1, %s1115_s29  ;;  %p1121_p7 = scmp.lt.s32.totalorder %s1115_s29, %s1115_s29 }
  0x14   :  { %59 = vadd.xlane.f32.xlu0 %v58_v3  ;;  %966 = vmatprep.subr.mxu0 %v95_v16 }
  0x15   :  { %967 = vmatpush3.msra.mxu0 %v95_v16  ;;  %p1122_p8 = por %p1121_p7, %p1120_p6 }
  0x16   :  { %968 = vmatprep.subr.mxu0 %v94_v17 }
  0x17   :  { %969 = vmatpush3.msra.mxu0 %v94_v17  ;;  %p1123_p9 = pnand %p1122_p8, %p1116_p5 }
  0x2a   :  { %215 = vrot.lane.b32.xlu0 %v1235_v19, %s1142_s26 }
  0x2e   :  { %207 = vrot.lane.b32.xlu0 %v1247_v21, %s1142_s26 }
  0x32   :  { %203 = vrot.lane.b32.xlu0 %v1257_v23, %s1142_s26 }
  0x99   :  { %v57_v4 = vpop.xlane.xlu0 %56 }
  0x9a   :  { %v62_v5 = vmul.f32 0.03125, %v57_v4 }
  0x9c   :  { %v64_v6 = vsub.f32 %v1200_v0, %v62_v5 }
  0x9d   :  { %v60_v7 = vpop.xlane.xlu0 %59 }
  0x9e   :  { %v63_v8 = vmul.f32 0.03125, %v60_v7  ;;  %v66_v9 = vmul.f32 %v64_v6, %v64_v6 }
  0xa0   :  { %v65_v10 = vsub.f32 %v1205_v1, %v63_v8  ;;  %v68_v11 = vsel %vm54_vm0, %v66_v9, 0.0 }
  0xa1   :  { %69 = vadd.xlane.f32.xlu1 %v68_v11  ;;  %v1281_v45 = vpop.permute.xlu0 %215 }
  0xa2   :  { %v67_v12 = vmul.f32 %v65_v10, %v65_v10 }
  0xa4   :  { %v71_v13 = vsel %vm54_vm0, %v67_v12, 0.0 }
  0xa5   :  { %72 = vadd.xlane.f32.xlu1 %v71_v13  ;;  %v1296_v53 = vpop.permute.xlu0 %207 }
  0xa9   :  { %v1309_v58 = vpop.permute.xlu0 %203 }
  0xb6   :  { %213 = vrot.lane.b32.xlu1 %v1230_v18, %s1142_s26 }
  0xba   :  { %211 = vrot.lane.b32.xlu1 %v1242_v20, %s1142_s26 }
  0xbe   :  { %209 = vrot.lane.b32.xlu1 %v187_v22, %s1142_s26 }
  0xc2   :  { %205 = vrot.lane.b32.xlu1 %v185_v24, %s1142_s26 }
  0xc6   :  { %201 = vrot.lane.b32.xlu1 %v183_v25, %s1142_s26 }
 0x12a   :  { %v70_v26 = vpop.xlane.xlu1 %69 }
 0x12b   :  { %v74_v27 = vmul.f32 0.03125, %v70_v26 }
 0x12d   :  { %v76_v28 = vadd.f32 1e-05, %v74_v27 }
 0x12e   :  { %v73_v29 = vpop.xlane.xlu1 %72 }
 0x12f   :  { %1075 = vrsqrt.f32 %v76_v28  ;;  %v75_v30 = vmul.f32 0.03125, %v73_v29 }
 0x131   :  { %v77_v31 = vadd.f32 1e-05, %v75_v30 }
 0x132   :  { %v1274_v42 = vpop.permute.xlu1 %213 }
 0x133   :  { %1077 = vrsqrt.f32 %v77_v31 }
 0x136   :  { %v1276_v43 = vpop.permute.xlu1 %211 }
 0x13a   :  { %v1285_v48 = vpop.permute.xlu1 %209 }
 0x13c   :  { %v1076_v32 = vpop.eup %1075 }
 0x13d   :  { %v80_v34 = vmul.f32 %v1076_v32, %v64_v6 }
 0x13e   :  { %v1301_v55 = vpop.permute.xlu1 %205 }
 0x13f   :  { %v86_v36 = vmul.f32 %v880_v33, %v80_v34 }
 0x140   :  { %v1078_v37 = vpop.eup %1077 }
 0x141   :  { %v81_v38 = vmul.f32 %v1078_v37, %v65_v10  ;;  %v92_v39 = vadd.f32 %v881_v35, %v86_v36  ;;  %v192_v36 = vld [vmem:[#allocation2 + $0x8] sm:$0xff] }
 0x142   :  { %v1314_v60 = vpop.permute.xlu1 %201 }
 0x143   :  { %v87_v40 = vmul.f32 %v880_v33, %v81_v38  ;;  %970 = vmatprep.mubr.msk.f32.mxu0 %vm54_vm0, %v92_v39  ;;  %v191_v39 = vld [vmem:[#allocation2] sm:$0xff] }
 0x145   :  { %v93_v41 = vadd.f32 %v881_v35, %v87_v40 }
 0x147   :  { %971 = vmatmul.mubr.msk.f32.vlgmr.msra.gmra.mxu0 %vm54_vm0, %v93_v41 }
 0x207   :  { %v972_v46 = vpop.f32.mrf.mxu0 }
 0x208   :  { %v1283_v47 = vadd.f32 %v972_v46, %v882_v44 }
 0x209   :  { %v174_v49 = vpop.f32.mrf.mxu0 }
 0x20a   :  { %v1287_v50 = vadd.f32 %v882_v44, %v174_v49  ;;  %v232_v51 = vmul.f32 %v1281_v45, %v1283_v47  ;;  %v230_v54 = vmul.f32 %v1276_v43, %v1283_v47  ;;  %v228_v57 = vmul.f32 %v1296_v53, %v1283_v47 }
 0x20b   :  { %v226_v61 = vmul.f32 %v1309_v58, %v1283_v47 }
 0x20c   :  { %989 = vmatprep.mubr.msk.f32.mxu1 %vm54_vm0, %v1287_v50  ;;  %287 = vrot.lane.b32.xlu0 %v232_v51, %s1143_s21  ;;  %v231_v52 = vmul.f32 %v1274_v42, %v1287_v50  ;;  %v229_v56 = vmul.f32 %v1285_v48, %v1287_v50  ;;  %v227_v59 = vmul.f32 %v1301_v55, %v1287_v50 }
 0x20d   :  { %v225_v62 = vmul.f32 %v1314_v60, %v1287_v50 }
 0x20e   :  { %285 = vrot.lane.b32.xlu1 %v231_v52, %s1143_s21 }
 0x210   :  { %283 = vrot.lane.b32.xlu0 %v230_v54, %s1143_s21 }
 0x212   :  { %281 = vrot.lane.b32.xlu1 %v229_v56, %s1143_s21 }
 0x214   :  { %279 = vrot.lane.b32.xlu0 %v228_v57, %s1143_s21 }
 0x216   :  { %277 = vrot.lane.b32.xlu1 %v227_v59, %s1143_s21 }
 0x218   :  { %275 = vrot.lane.b32.xlu0 %v226_v61, %s1143_s21  ;;  %v539_v61 = vld [vmem:[%s1509_s2 + $0x18] sm:$0xff] }
 0x21a   :  { %273 = vrot.lane.b32.xlu1 %v225_v62, %s1143_s21  ;;  %v536_v62 = vld [vmem:[%s1509_s2] sm:$0xff] }
 0x21c   :  { %247 = vrot.lane.b32.xlu0 %v1235_v19, %s1144_s22 }
 0x21e   :  { %245 = vrot.lane.b32.xlu1 %v1230_v18, %s1144_s22 }
 0x220   :  { %243 = vrot.lane.b32.xlu0 %v1242_v20, %s1144_s22 }
 0x222   :  { %241 = vrot.lane.b32.xlu1 %v187_v22, %s1144_s22 }
 0x224   :  { %239 = vrot.lane.b32.xlu0 %v1247_v21, %s1144_s22 }
 0x226   :  { %237 = vrot.lane.b32.xlu1 %v185_v24, %s1144_s22 }
 0x228   :  { %235 = vrot.lane.b32.xlu0 %v1257_v23, %s1144_s22 }
 0x22a   :  { %233 = vrot.lane.b32.xlu1 %v183_v25, %s1144_s22 }
 0x27e   :  { %v288_v63 = vpop.permute.xlu0 %287 }
 0x27f   :  { %973 = vmatprep.subr.msk.mxu1 %vm54_vm0, %v288_v63 }
 0x280   :  { %v286_v2 = vpop.permute.xlu1 %285  ;;  %974 = vmatpush3.xpose.msk.msra.mxu1 %vm54_vm0, %v288_v63 }
 0x281   :  { %975 = vmatprep.subr.msk.mxu1 %vm54_vm0, %v286_v2 }
 0x282   :  { %v284_v3 = vpop.permute.xlu0 %283 }
 0x284   :  { %v282_v4 = vpop.permute.xlu1 %281  ;;  %976 = vmatpush3.xpose.msk.msra.mxu1 %vm54_vm0, %v286_v2 }
 0x285   :  { %977 = vmatprep.subr.msk.mxu1 %vm54_vm0, %v284_v3 }
 0x286   :  { %v280_v5 = vpop.permute.xlu0 %279 }
 0x288   :  { %v278_v6 = vpop.permute.xlu1 %277  ;;  %978 = vmatpush3.xpose.msk.msra.mxu1 %vm54_vm0, %v284_v3 }
 0x289   :  { %979 = vmatprep.subr.msk.mxu1 %vm54_vm0, %v282_v4 }
 0x28a   :  { %v276_v7 = vpop.permute.xlu0 %275 }
 0x28c   :  { %v274_v8 = vpop.permute.xlu1 %273  ;;  %980 = vmatpush3.xpose.msk.msra.mxu1 %vm54_vm0, %v282_v4 }
 0x28d   :  { %981 = vmatprep.subr.msk.mxu1 %vm54_vm0, %v280_v5 }
 0x28e   :  { %v248_v9 = vpop.permute.xlu0 %247 }
 0x28f   :  { %v264_v10 = vmul.f32 %v248_v9, %v1283_v47  ;;  %v897_v9 = vld [vmem:[%s1512_s5 + $0x3] ss:$0 sm:$0xff] }
 0x290   :  { %v246_v11 = vpop.permute.xlu1 %245  ;;  %982 = vmatpush3.xpose.msk.msra.mxu1 %vm54_vm0, %v280_v5 }
 0x291   :  { %v263_v12 = vmul.f32 %v246_v11, %v1287_v50  ;;  %983 = vmatprep.subr.msk.mxu1 %vm54_vm0, %v278_v6  ;;  %425 = vrot.lane.b32.xlu0 %v264_v10, %s1144_s22 }
 0x292   :  { %v244_v13 = vpop.permute.xlu0 %243 }
 0x293   :  { %v262_v14 = vmul.f32 %v244_v13, %v1283_v47  ;;  %423 = vrot.lane.b32.xlu1 %v263_v12, %s1144_s22 }
 0x294   :  { %v242_v15 = vpop.permute.xlu1 %241  ;;  %984 = vmatpush3.xpose.msk.msra.mxu1 %vm54_vm0, %v278_v6 }
 0x295   :  { %v261_v16 = vmul.f32 %v242_v15, %v1287_v50  ;;  %985 = vmatprep.subr.msk.mxu1 %vm54_vm0, %v276_v7  ;;  %421 = vrot.lane.b32.xlu0 %v262_v14, %s1144_s22 }
 0x296   :  { %v240_v17 = vpop.permute.xlu0 %239 }
 0x297   :  { %v260_v18 = vmul.f32 %v240_v17, %v1283_v47  ;;  %419 = vrot.lane.b32.xlu1 %v261_v16, %s1144_s22 }
 0x298   :  { %v238_v19 = vpop.permute.xlu1 %237  ;;  %986 = vmatpush3.xpose.msk.msra.mxu1 %vm54_vm0, %v276_v7 }
 0x299   :  { %v259_v20 = vmul.f32 %v238_v19, %v1287_v50  ;;  %987 = vmatprep.subr.msk.mxu1 %vm54_vm0, %v274_v8  ;;  %417 = vrot.lane.b32.xlu0 %v260_v18, %s1144_s22 }
 0x29a   :  { %v236_v21 = vpop.permute.xlu0 %235 }
 0x29b   :  { %415 = vrot.lane.b32.xlu1 %v259_v20, %s1144_s22  ;;  %v258_v46 = vmul.f32 %v236_v21, %v1283_v47 }
 0x29c   :  { %988 = vmatpush3.xpose.msk.msra.mxu1 %vm54_vm0, %v274_v8  ;;  %v234_v22 = vpop.permute.xlu1 %233 }
 0x29f   :  { %990 = vmatmul.mubr.msk.f32.vlgmr.msra.gmra.mxu1 %vm54_vm0, %v1283_v47 }
 0x303   :  { %v426_v23 = vpop.permute.xlu0 %425 }
 0x304   :  { %v442_v24 = vsel %vm54_vm0, %v426_v23, %v1281_v45  ;;  %v257_v45 = vmul.f32 %v234_v22, %v1287_v50 }
 0x305   :  { %v424_v25 = vpop.permute.xlu1 %423  ;;  %992 = vmatprep.subr.mxu0 %v442_v24 }
 0x306   :  { %993 = vmatpush3.msra.mxu0 %v442_v24  ;;  %v441_v26 = vsel %vm54_vm0, %v424_v25, %v1274_v42 }
 0x307   :  { %994 = vmatprep.subr.mxu0 %v441_v26  ;;  %v422_v27 = vpop.permute.xlu0 %421 }
 0x308   :  { %995 = vmatpush3.msra.mxu0 %v441_v26  ;;  %v440_v28 = vsel %vm54_vm0, %v422_v27, %v1276_v43  ;;  %v668_v26 = vld [vmem:[%s1510_s3 + $0x18] sm:$0xff]  ;;  %v667_v27 = vld [vmem:[%s1510_s3 + $0x10] sm:$0xff] }
 0x309   :  { %v420_v29 = vpop.permute.xlu1 %419  ;;  %996 = vmatprep.subr.mxu0 %v440_v28 }
 0x30a   :  { %997 = vmatpush3.msra.mxu0 %v440_v28  ;;  %v439_v30 = vsel %vm54_vm0, %v420_v29, %v1285_v48  ;;  %v666_v28 = vld [vmem:[%s1510_s3 + $0x8] sm:$0xff]  ;;  %v665_v29 = vld [vmem:[%s1510_s3] sm:$0xff] }
 0x30b   :  { %998 = vmatprep.subr.mxu0 %v439_v30  ;;  %v418_v31 = vpop.permute.xlu0 %417 }
 0x30c   :  { %999 = vmatpush3.msra.mxu0 %v439_v30  ;;  %v438_v32 = vsel %vm54_vm0, %v418_v31, %v1296_v53  ;;  %v779_v30 = vld [vmem:[%s1511_s4 + $0x78] sm:$0xff]  ;;  %v778_v31 = vld [vmem:[%s1511_s4 + $0x70] sm:$0xff] }
 0x30d   :  { %v416_v33 = vpop.permute.xlu1 %415  ;;  %1000 = vmatprep.subr.mxu0 %v438_v32  ;;  %1033 = vmatprep.subr.mxu1 %v779_v30 }
 0x30e   :  { %1001 = vmatpush3.msra.mxu0 %v438_v32  ;;  %v437_v34 = vsel %vm54_vm0, %v416_v33, %v1301_v55  ;;  %1034 = vmatpush3.msra.mxu1 %v779_v30  ;;  %v777_v32 = vld [vmem:[%s1511_s4 + $0x68] sm:$0xff] }
 0x30f   :  { %1002 = vmatprep.subr.mxu0 %v437_v34  ;;  %1035 = vmatprep.subr.mxu1 %v778_v31 }
 0x310   :  { %1003 = vmatpush3.msra.mxu0 %v437_v34  ;;  %1036 = vmatpush3.msra.mxu1 %v778_v31 }
 0x311   :  { %1037 = vmatprep.subr.mxu1 %v777_v32 }
 0x312   :  { %1038 = vmatpush3.msra.mxu1 %v777_v32 }
 0x35f   :  { %v991_v35 = vpop.f32.mrf.mxu1 }
 0x360   :  { %v387_v37 = vmul.f32 0.35355338, %v991_v35 }
 0x361   :  { %v377_v38 = vpop.f32.mrf.mxu1 }
 0x362   :  { %v386_v40 = vmul.f32 0.35355338, %v377_v38  ;;  %v389_v41 = vadd.f32 %v387_v37, %v192_v36 }
 0x364   :  { %v394_v42 = vsel %vm390_vm1, %v389_v41, -inf  ;;  %v388_v43 = vadd.f32 %v386_v40, %v191_v39  ;;  %v900_v40 = vld [vmem:[%s1512_s5 + $0x4] ss:$0 sm:$0xff] }
 0x365   :  { %395 = vmax.xlane.f32.xlu1 %v394_v42  ;;  %v901_v42 = vld [vmem:[%s1512_s5 + $0x5] ss:$0 sm:$0xff] }
 0x366   :  { %v391_v44 = vsel %vm390_vm1, %v388_v43, -inf }
 0x367   :  { %392 = vmax.xlane.f32.xlu0 %v391_v44 }
 0x376   :  { %411 = vrot.lane.b32.xlu1 %v257_v45, %s1144_s22 }
 0x37d   :  { %413 = vrot.lane.b32.xlu0 %v258_v46, %s1144_s22 }
 0x3ee   :  { %v396_v48 = vpop.xlane.xlu1 %395 }
 0x3ef   :  { %v398_v49 = vsub.f32 %v389_v41, %v396_v48 }
 0x3f0   :  { %v393_v51 = vpop.xlane.xlu0 %392 }
 0x3f1   :  { %v397_v52 = vsub.f32 %v388_v43, %v393_v51  ;;  %v401_v53 = vmul.f32 1.442695, %v398_v49  ;;  %v776_v51 = vld [vmem:[%s1511_s4 + $0x60] sm:$0xff] }
 0x3f2   :  { %v412_v55 = vpop.permute.xlu1 %411  ;;  %1039 = vmatprep.subr.mxu1 %v776_v51 }
 0x3f3   :  { %v399_v54 = vmul.f32 1.442695, %v397_v52  ;;  %v435_v47 = vsel %vm54_vm0, %v412_v55, %v1314_v60  ;;  %v537_v60 = vld [vmem:[%s1509_s2 + $0x8] sm:$0xff]  ;;  %1040 = vmatpush3.msra.mxu1 %v776_v51  ;;  %v775_v52 = vld [vmem:[%s1511_s4 + $0x58] sm:$0xff]  ;;  %v772_v55 = vld [vmem:[%s1511_s4 + $0x40] sm:$0xff] }
 0x3f4   :  { %v414_v56 = vpop.permute.xlu0 %413  ;;  %1041 = vmatprep.subr.mxu1 %v775_v52 }
 0x3f5   :  { %1079 = vpow2.f32 %v399_v54  ;;  %v436_v57 = vsel %vm54_vm0, %v414_v56, %v1309_v58  ;;  %v538_v58 = vld [vmem:[%s1509_s2 + $0x10] sm:$0xff]  ;;  %1042 = vmatpush3.msra.mxu1 %v775_v52  ;;  %v773_v54 = vld [vmem:[%s1511_s4 + $0x48] sm:$0xff]  ;;  %v771_v56 = vld [vmem:[%s1511_s4 + $0x38] sm:$0xff] }
 0x3f6   :  { %1081 = vpow2.f32 %v401_v53  ;;  %1004 = vmatprep.subr.mxu0 %v436_v57  ;;  %v774_v53 = vld [vmem:[%s1511_s4 + $0x50] sm:$0xff] }
 0x3f7   :  { %1005 = vmatpush3.msra.mxu0 %v436_v57  ;;  %1043 = vmatprep.subr.mxu1 %v774_v53  ;;  %v770_v57 = vld [vmem:[%s1511_s4 + $0x30] sm:$0xff] }
 0x3f8   :  { %1006 = vmatprep.subr.mxu0 %v435_v47  ;;  %1044 = vmatpush3.msra.mxu1 %v774_v53 }
 0x3f9   :  { %1007 = vmatpush3.msra.mxu0 %v435_v47  ;;  %1045 = vmatprep.subr.mxu1 %v773_v54  ;;  %v769_v47 = vld [vmem:[%s1511_s4 + $0x28] sm:$0xff] }
 0x3fa   :  { %1011 = vmatprep.subr.mxu0 %v539_v61  ;;  %1046 = vmatpush3.msra.mxu1 %v773_v54 }
 0x3fb   :  { %1047 = vmatprep.subr.mxu1 %v772_v55 }
 0x3fc   :  { %1048 = vmatpush3.msra.mxu1 %v772_v55 }
 0x3fd   :  { %1049 = vmatprep.subr.mxu1 %v771_v56 }
 0x3fe   :  { %1050 = vmatpush3.msra.mxu1 %v771_v56 }
 0x3ff   :  { %1051 = vmatprep.subr.mxu1 %v770_v57 }
 0x400   :  { %1052 = vmatpush3.msra.mxu1 %v770_v57 }
 0x401   :  { %1053 = vmatprep.subr.mxu1 %v769_v47 }
 0x402   :  { %v1080_v50 = vpop.eup %1079  ;;  %1054 = vmatpush3.msra.mxu1 %v769_v47 }
 0x403   :  { %v1082_v59 = vpop.eup %1081  ;;  %1008 = vmatprep.mubr.msk.f32.mxu0 %vm390_vm1, %v1080_v50  ;;  %v768_v50 = vld [vmem:[%s1511_s4 + $0x20] sm:$0xff] }
 0x404   :  { %1009 = vmatmul.mubr.msk.f32.vlgmr.msra.gmra.mxu0 %vm390_vm1, %v1082_v59  ;;  %1055 = vmatprep.subr.mxu1 %v768_v50  ;;  %v767_v59 = vld [vmem:[%s1511_s4 + $0x18] sm:$0xff] }
 0x405   :  { %1012 = vmatpush3.msra.mxu0 %v539_v61  ;;  %1056 = vmatpush3.msra.mxu1 %v768_v50  ;;  %v766_v61 = vld [vmem:[%s1511_s4 + $0x10] sm:$0xff] }
 0x406   :  { %1013 = vmatprep.subr.mxu0 %v538_v58  ;;  %1057 = vmatprep.subr.mxu1 %v767_v59 }
 0x407   :  { %1014 = vmatpush3.msra.mxu0 %v538_v58  ;;  %1058 = vmatpush3.msra.mxu1 %v767_v59  ;;  %v765_v58 = vld [vmem:[%s1511_s4 + $0x8] sm:$0xff] }
 0x408   :  { %1015 = vmatprep.subr.mxu0 %v537_v60  ;;  %1059 = vmatprep.subr.mxu1 %v766_v61 }
 0x409   :  { %1016 = vmatpush3.msra.mxu0 %v537_v60  ;;  %1060 = vmatpush3.msra.mxu1 %v766_v61  ;;  %v764_v60 = vld [vmem:[%s1511_s4] sm:$0xff] }
 0x40a   :  { %1017 = vmatprep.subr.mxu0 %v536_v62  ;;  %1061 = vmatprep.subr.mxu1 %v765_v58 }
 0x40b   :  { %1018 = vmatpush3.msra.mxu0 %v536_v62  ;;  %1062 = vmatpush3.msra.mxu1 %v765_v58  ;;  %v902_v62 = vld [vmem:[%s1512_s5 + $0x6] ss:$0 sm:$0xff] }
 0x40c   :  { %1022 = vmatprep.subr.mxu0 %v668_v26  ;;  %1063 = vmatprep.subr.mxu1 %v764_v60 }
 0x40d   :  { %1064 = vmatpush3.msra.mxu1 %v764_v60 }
 0x4c4   :  { %v1010_v63 = vpop.f32.mrf.mxu0 }
 0x4c5   :  { %528 = vrot.lane.b32.xlu1 %v1010_v63, %s1143_s21 }
 0x4c6   :  { %v515_v2 = vpop.f32.mrf.mxu0 }
 0x4c7   :  { %526 = vrot.lane.b32.xlu0 %v515_v2, %s1143_s21 }
 0x537   :  { %v529_v3 = vpop.permute.xlu1 %528 }
 0x538   :  { %1083 = vrcp.f32 %v529_v3 }
 0x539   :  { %v527_v4 = vpop.permute.xlu0 %526 }
 0x53a   :  { %1085 = vrcp.f32 %v527_v4 }
 0x545   :  { %v1084_v5 = vpop.eup %1083 }
 0x546   :  { %v535_v8 = vmul.f32 %v1084_v5, %v1010_v63 }
 0x547   :  { %v1086_v6 = vpop.eup %1085 }
 0x548   :  { %v533_v7 = vmul.f32 %v1086_v6, %v515_v2 }
 0x54a   :  { %1019 = vmatprep.mubr.msk.f32.mxu0 %vm54_vm0, %v533_v7 }
 0x54b   :  { %1020 = vmatmul.mubr.msk.f32.vlgmr.msra.gmra.mxu0 %vm54_vm0, %v535_v8 }
 0x54c   :  { %1023 = vmatpush3.msra.mxu0 %v668_v26 }
 0x54d   :  { %1024 = vmatprep.subr.mxu0 %v667_v27 }
 0x54e   :  { %1025 = vmatpush3.msra.mxu0 %v667_v27 }
 0x54f   :  { %1026 = vmatprep.subr.mxu0 %v666_v28 }
 0x550   :  { %1027 = vmatpush3.msra.mxu0 %v666_v28 }
 0x551   :  { %1028 = vmatprep.subr.mxu0 %v665_v29 }
 0x552   :  { %1029 = vmatpush3.msra.mxu0 %v665_v29 }
 0x60b   :  { %v1021_v10 = vpop.f32.mrf.mxu0 }
 0x60c   :  { %v622_v11 = vadd.f32 %v1021_v10, %v897_v9 }
 0x60d   :  { %v616_v12 = vpop.f32.mrf.mxu0 }
 0x60e   :  { %v1410_v13 = vadd.f32 %v622_v11, %v1205_v1  ;;  %v617_v14 = vadd.f32 %v897_v9, %v616_v12 }
 0x610   :  { %v1413_v15 = vadd.f32 %v617_v14, %v1200_v0  ;;  %v630_v16 = vsel %vm54_vm0, %v1410_v13, 0.0 }
 0x611   :  { %631 = vadd.xlane.f32.xlu1 %v630_v16 }
 0x612   :  { %v627_v17 = vsel %vm54_vm0, %v1413_v15, 0.0 }
 0x613   :  { %628 = vadd.xlane.f32.xlu0 %v627_v17  ;;  %v905_v17 = vld [vmem:[%s1512_s5 + $0x7] ss:$0 sm:$0xff] }
 0x69a   :  { %v632_v18 = vpop.xlane.xlu1 %631 }
 0x69b   :  { %v634_v19 = vmul.f32 0.03125, %v632_v18 }
 0x69c   :  { %v629_v20 = vpop.xlane.xlu0 %628 }
 0x69d   :  { %v633_v21 = vmul.f32 0.03125, %v629_v20  ;;  %v636_v22 = vsub.f32 %v1410_v13, %v634_v19 }
 0x69f   :  { %v635_v1 = vsub.f32 %v1413_v15, %v633_v21  ;;  %v638_v24 = vmul.f32 %v636_v22, %v636_v22 }
 0x6a1   :  { %v637_v23 = vmul.f32 %v635_v1, %v635_v1  ;;  %v642_v25 = vsel %vm54_vm0, %v638_v24, 0.0 }
 0x6a3   :  { %v639_v0 = vsel %vm54_vm0, %v637_v23, 0.0 }
 0x6a4   :  { %640 = vadd.xlane.f32.xlu0 %v639_v0 }
 0x6a8   :  { %643 = vadd.xlane.f32.xlu0 %v642_v25 }
 0x72d   :  { %v641_v33 = vpop.xlane.xlu0 %640 }
 0x72e   :  { %v645_v34 = vmul.f32 0.03125, %v641_v33 }
 0x730   :  { %v647_v35 = vadd.f32 1e-05, %v645_v34 }
 0x731   :  { %v644_v36 = vpop.xlane.xlu0 %643 }
 0x732   :  { %1087 = vrsqrt.f32 %v647_v35  ;;  %v646_v37 = vmul.f32 0.03125, %v644_v36 }
 0x734   :  { %v648_v38 = vadd.f32 1e-05, %v646_v37 }
 0x736   :  { %1089 = vrsqrt.f32 %v648_v38 }
 0x73f   :  { %v1088_v39 = vpop.eup %1087 }
 0x740   :  { %v651_v41 = vmul.f32 %v1088_v39, %v635_v1 }
 0x742   :  { %v657_v43 = vmul.f32 %v900_v40, %v651_v41 }
 0x743   :  { %v1090_v44 = vpop.eup %1089 }
 0x744   :  { %v652_v45 = vmul.f32 %v1090_v44, %v636_v22  ;;  %v663_v46 = vadd.f32 %v901_v42, %v657_v43 }
 0x746   :  { %v658_v48 = vmul.f32 %v900_v40, %v652_v45  ;;  %1030 = vmatprep.mubr.msk.f32.mxu0 %vm54_vm0, %v663_v46 }
 0x748   :  { %v664_v49 = vadd.f32 %v901_v42, %v658_v48 }
 0x74a   :  { %1031 = vmatmul.mubr.msk.f32.vlgmr.msra.gmra.mxu0 %vm54_vm0, %v664_v49 }
 0x80a   :  { %v1032_v63 = vpop.f32.mrf.mxu0 }
 0x80b   :  { %v751_v2 = vadd.f32 %v1032_v63, %v902_v62 }
 0x80c   :  { %v745_v3 = vpop.f32.mrf.mxu0 }
 0x80d   :  { %v757_v4 = vmul.f32 0.70710677, %v751_v2  ;;  %v746_v5 = vadd.f32 %v902_v62, %v745_v3  ;;  %v755_v12 = vmul.f32 0.5, %v751_v2 }
 0x80f   :  { %1091 = verf.f32 %v757_v4  ;;  %v756_v6 = vmul.f32 0.70710677, %v746_v5  ;;  %v754_v10 = vmul.f32 0.5, %v746_v5 }
 0x811   :  { %1093 = verf.f32 %v756_v6 }
 0x81c   :  { %v1092_v7 = vpop.eup %1091 }
 0x81d   :  { %v761_v9 = vadd.f32 1.0, %v1092_v7 }
 0x81e   :  { %v1094_v8 = vpop.eup %1093 }
 0x81f   :  { %v760_v11 = vadd.f32 1.0, %v1094_v8  ;;  %v763_v16 = vmul.f32 %v761_v9, %v755_v12 }
 0x821   :  { %v762_v14 = vmul.f32 %v760_v11, %v754_v10 }
 0x823   :  { %1065 = vmatprep.mubr.f32.mxu1 %v762_v14 }
 0x824   :  { %1066 = vmatmul.mubr.f32.vlgmr.msra.gmra.mxu1 %v763_v16 }
 0x8e4   :  { %v1067_v18 = vpop.f32.mrf.mxu1 }
 0x8e5   :  { %v856_v19 = vadd.f32 %v1067_v18, %v905_v17 }
 0x8e6   :  { %v850_v20 = vpop.f32.mrf.mxu1 }
 0x8e7   :  { %v860_v21 = vadd.f32 %v856_v19, %v1410_v13  ;;  %v851_v22 = vadd.f32 %v905_v17, %v850_v20 }
 0x8e9   :  { %862 = vst.msk [vmem:[#allocation5 + $0x8] sm:$0xff] %vm54_vm0, %v860_v21  ;;  %v859_v1 = vadd.f32 %v851_v22, %v1413_v15 }
 0x8eb   :  { %861 = vst.msk [vmem:[#allocation5] sm:$0xff] %vm54_vm0, %v859_v1 }
 0x8ec   :  { %1126 = shalt.err (!%p1123_p9)
}
 0x8ed   :  { %874 = dma.vmem_to_hbm [thread:$0]  %s869_s1, 256, %s1515_s8, [#allocation4], %s1140_s30, %s1140_s30, %s1141_s9  }
 0x8ee   :  { %1137 = dma.done.wait [#allocation4], 256  }
 0x8ef   :  { %1138 = vsyncadd [#allocation4], 4294967040 }
 0x8f0   :  { %878 = vsyncpa [#allocation3], 1 }
 0x8f1   :  { %879 = vsyncpa [#allocation4], 1 }

</bundles_post_ra>
